<compile_context>
chip_gen: v7x
topology: tpu7x:2x2x1
jax: 0.10.0
libtpu: 0.0.40
codegen_flags: <defaults>
</compile_context>

<pallas_src>
import functools

import numpy as np
import jax
import jax.numpy as jnp
from jax import lax
from jax.experimental import pallas as pl
from jax.experimental.pallas import tpu as pltpu

EPS = 1e-5


def _round_up(x, m):
    return -(-x // m) * m


# ------------------------------- fused kernel --------------------------------

def _conv_stack_kernel(x_hbm, m1_ref, sh1_ref, m2_ref, sh2_ref, m3_ref, sh3_ref,
                       wf_ref, bf_ref, o_ref, xbuf, sem, *, tt, t_valid, spb):
    """One time slab: grid step s covers combined rows [s*tt, s*tt + tt).

    x_hbm  : (B*T_seg + 8, F) bf16 in HBM; row g+3 holds batch-major time row g.
    m*_ref : (K, 3*N) bf16 banded conv-as-matmul weights; columns grouped by time
             tap [tap0|tap1|tap2]; pooled layers carry [even|odd] inside a tap.
    sh*    : (1, N') f32 folded BN shift per output lane.
    wf_ref : (C2*F/4, n_pad) bf16 fc weight (lane-padded); bf_ref: (1, n_pad) f32.
    o_ref  : (tt, n_pad) f32 output block.
    xbuf   : VMEM (tt+8, F) bf16 scratch; sem: DMA semaphore.
    """
    s = pl.program_id(0)

    # Manual DMA of this slab's overlapping halo window (no wrapper-side input
    # duplication).  TODO(synk): double-buffer this copy across grid steps.
    row0 = pl.multiple_of(s * tt, 8)
    cp = pltpu.make_async_copy(x_hbm.at[pl.ds(row0, tt + 8), :], xbuf, sem.at[0])
    cp.start()

    # Row-validity mask: one hoisted iota, sliced per layer.  Emulates the zero
    # padding each conv sees at the [0, T) sequence edges and blanks rows of the
    # neighbouring batch that the halo window may have fetched.
    t0 = (s % spb) * tt if spb > 1 else 0            # batch-local time of output row 0
    gt = (t0 - 3) + lax.broadcasted_iota(jnp.int32, (tt + 6, 1), 0)
    keep = ((gt >= 0) & (gt < t_valid)).astype(jnp.float32)      # (tt+6, 1)

    cp.wait()

    def conv(z, m_ref, sh_ref, rows, pool):
        # z: (rows+2, K) bf16.  Single MXU dot; the 3 time taps sit side by side
        # along the output lanes and are summed with two row-shifted slice adds.
        y = jnp.dot(z, m_ref[...], preferred_element_type=jnp.float32)
        n = y.shape[1] // 3
        acc = y[0:rows, 0:n] + y[1:rows + 1, n:2 * n] + y[2:rows + 2, 2 * n:]
        if pool:                                     # MaxPool2d((1,2)): even|odd halves
            h = n // 2
            acc = jnp.maximum(acc[:, :h], acc[:, h:])
        return jnp.maximum(acc + sh_ref[...], 0.0)   # folded BN shift + ReLU (f32)

    x = xbuf[0:tt + 6, :] * keep.astype(jnp.bfloat16)              # (tt+6, F) bf16
    y1 = conv(x, m1_ref, sh1_ref, tt + 4, False)                   # (tt+4, C1*F)
    y1 = (y1 * keep[1:tt + 5]).astype(jnp.bfloat16)
    y2 = conv(y1, m2_ref, sh2_ref, tt + 2, True)                   # (tt+2, C1*F/2)
    y2 = (y2 * keep[2:tt + 4]).astype(jnp.bfloat16)
    y3 = conv(y2, m3_ref, sh3_ref, tt, True).astype(jnp.bfloat16)  # (tt,   C2*F/4)

    # fc (Dropout is identity at inference); output lanes are 128-padded.
    o_ref[...] = jnp.dot(y3, wf_ref[...],
                         preferred_element_type=jnp.float32) + bf_ref[...]


# ------------------------------ JAX-side glue ---------------------------------

def _bn_fold(b, g, be, mean, var):
    scale = g / jnp.sqrt(var + EPS)
    shift = be + (b - mean) * scale
    return scale, shift


def _banded(w, scale, f_in, f_out, parity):
    """Banded conv-as-matmul matrices, one per time tap: (3, Cin*f_in, Cout*f_out).

    Lane layout is channel-major (lane = c * F + f), matching the module's
    transpose(1,2).flatten(-2), so the fc needs no permutation.
    parity: None -> plain conv; 0/1 -> only even/odd output columns (MaxPool(1,2)).
    """
    c_out, c_in = w.shape[0], w.shape[1]
    sel = np.zeros((3, f_in, f_out), np.float32)
    for kw in range(3):
        for fo in range(f_out):
            fi = (fo if parity is None else 2 * fo + parity) + kw - 1
            if 0 <= fi < f_in:
                sel[kw, fi, fo] = 1.0
    ws = w * scale[:, None, None, None]                         # fold BN scale
    m = jnp.einsum("wfg,oihw->hifog", jnp.asarray(sel), ws)     # (3, Cin, f_in, Cout, f_out)
    return m.reshape(3, c_in * f_in, c_out * f_out)


def _tapcat(m):
    """(3, K, N) -> (K, 3N): the three time taps side by side along output lanes."""
    return jnp.concatenate([m[0], m[1], m[2]], axis=1)


def conv_stack_forward(data_nchw, params):
    """data_nchw: (B, 1, T, F), exactly like the PyTorch module."""
    B, cin0, T, F = data_nchw.shape
    assert cin0 == 1 and F % 4 == 0, "input_features must be divisible by 4"
    C1 = params["w1"].shape[0]
    C2 = params["w3"].shape[0]
    F2, F4 = F // 2, F // 4
    n_out = params["wf"].shape[0]
    n_pad = _round_up(n_out, 128)                     # lane-dense output stores

    # --- time tiling: per-batch segments of spb slabs of TT rows (TT <= 256) ---
    spb = -(-T // 256)                                # slabs per batch
    TT = _round_up(-(-T // spb), 8)                   # rows per slab (multiple of 8)
    T_seg = spb * TT
    n_slabs = B * spb                                 # >= B "parallel" grid steps

    # --- pack batches onto one padded batch-major time axis (bf16, stays in HBM) ---
    x = data_nchw[:, 0].astype(jnp.bfloat16)                          # (B, T, F)
    x = jnp.pad(x, ((0, 0), (0, T_seg - T), (0, 0))).reshape(B * T_seg, F)
    x_pad = jnp.pad(x, ((3, 5), (0, 0)))              # +3 leading halo, +5 tail rows

    # --- fold BN, build tap- and pool-fused banded matrices (bf16) ---
    s1, sh1 = _bn_fold(params["b1"], params["g1"], params["be1"], params["m1"], params["v1"])
    s2, sh2 = _bn_fold(params["b2"], params["g2"], params["be2"], params["m2"], params["v2"])
    s3, sh3 = _bn_fold(params["b3"], params["g3"], params["be3"], params["m3"], params["v3"])

    m1 = _tapcat(_banded(params["w1"], s1, F, F, None))               # (F,     3*C1*F)
    m2 = _tapcat(jnp.concatenate([_banded(params["w2"], s2, F, F2, 0),
                                  _banded(params["w2"], s2, F, F2, 1)], axis=-1))
    m3 = _tapcat(jnp.concatenate([_banded(params["w3"], s3, F2, F4, 0),
                                  _banded(params["w3"], s3, F2, F4, 1)], axis=-1))
    m1, m2, m3 = (m.astype(jnp.bfloat16) for m in (m1, m2, m3))
    # m2: (C1*F, 3*C1*F)   m3: (C1*F2, 6*C2*F4)

    sh1v = jnp.repeat(sh1, F).reshape(1, -1).astype(jnp.float32)      # (1, C1*F)
    sh2v = jnp.repeat(sh2, F2).reshape(1, -1).astype(jnp.float32)     # (1, C1*F2)
    sh3v = jnp.repeat(sh3, F4).reshape(1, -1).astype(jnp.float32)     # (1, C2*F4)

    wf = jnp.zeros((C2 * F4, n_pad), jnp.bfloat16)
    wf = wf.at[:, :n_out].set(params["wf"].T.astype(jnp.bfloat16))
    bfv = jnp.zeros((1, n_pad), jnp.float32)
    bfv = bfv.at[:, :n_out].set(params["bf"].reshape(1, -1).astype(jnp.float32))

    out = pl.pallas_call(
        functools.partial(_conv_stack_kernel, tt=TT, t_valid=T, spb=spb),
        out_shape=jax.ShapeDtypeStruct((B * T_seg, n_pad), jnp.float32),
        grid=(n_slabs,),
        in_specs=[
            pl.BlockSpec(memory_space=pl.ANY),                       # x stays in HBM
            pl.BlockSpec((F, 3 * C1 * F),        lambda s: (0, 0)),
            pl.BlockSpec((1, C1 * F),            lambda s: (0, 0)),
            pl.BlockSpec((C1 * F, 3 * C1 * F),   lambda s: (0, 0)),
            pl.BlockSpec((1, C1 * F2),           lambda s: (0, 0)),
            pl.BlockSpec((C1 * F2, 6 * C2 * F4), lambda s: (0, 0)),
            pl.BlockSpec((1, C2 * F4),           lambda s: (0, 0)),
            pl.BlockSpec((C2 * F4, n_pad),       lambda s: (0, 0)),
            pl.BlockSpec((1, n_pad),             lambda s: (0, 0)),
        ],
        out_specs=pl.BlockSpec((TT, n_pad), lambda s: (s, 0)),
        scratch_shapes=[pltpu.VMEM((TT + 8, F), jnp.bfloat16),
                        pltpu.SemaphoreType.DMA((1,))],
        compiler_params=pltpu.CompilerParams(
            dimension_semantics=("parallel",),
            vmem_limit_bytes=64 * 1024 * 1024),
    )(x_pad, m1, sh1v, m2, sh2v, m3, sh3v, wf, bfv)

    return out.reshape(B, T_seg, n_pad)[:, :T, :n_out]


# -------------------------- deterministic parameters --------------------------

def init_params(key, input_features, output_features):
    C1 = output_features // 16
    C2 = output_features // 8
    fc_in = C2 * (input_features // 4)
    ks = jax.random.split(key, 20)

    def u(k, shape, lo=-0.25, hi=0.25):
        return jax.random.uniform(k, shape, jnp.float32, lo, hi)

    return dict(
        w1=u(ks[0], (C1, 1, 3, 3)), b1=u(ks[1], (C1,)),
        g1=u(ks[2], (C1,), 0.8, 1.2), be1=u(ks[3], (C1,)),
        m1=u(ks[4], (C1,)), v1=u(ks[5], (C1,), 0.8, 1.2),

        w2=u(ks[6], (C1, C1, 3, 3)), b2=u(ks[7], (C1,)),
        g2=u(ks[8], (C1,), 0.8, 1.2), be2=u(ks[9], (C1,)),
        m2=u(ks[10], (C1,)), v2=u(ks[11], (C1,), 0.8, 1.2),

        w3=u(ks[12], (C2, C1, 3, 3)), b3=u(ks[13], (C2,)),
        g3=u(ks[14], (C2,), 0.8, 1.2), be3=u(ks[15], (C2,)),
        m3=u(ks[16], (C2,)), v3=u(ks[17], (C2,), 0.8, 1.2),

        wf=u(ks[18], (output_features, fc_in)), bf=u(ks[19], (output_features,)),
    )


# ------------------------------ pure-JAX reference -----------------------------

def ref_forward(data_nchw, params):
    x = data_nchw.astype(jnp.float32)

    def conv(x, w, b):
        y = lax.conv_general_dilated(x, w, (1, 1), "SAME",
                                     dimension_numbers=("NCHW", "OIHW", "NCHW"))
        return y + b[None, :, None, None]

    def bn(x, g, be, m, v):
        return ((x - m[None, :, None, None])
                * (g / jnp.sqrt(v + EPS))[None, :, None, None]
                + be[None, :, None, None])

    def pool(x):
        B, C, T, F = x.shape
        return x.reshape(B, C, T, F // 2, 2).max(-1)

    x = jax.nn.relu(bn(conv(x, params["w1"], params["b1"]),
                       params["g1"], params["be1"], params["m1"], params["v1"]))
    x = jax.nn.relu(bn(conv(x, params["w2"], params["b2"]),
                       params["g2"], params["be2"], params["m2"], params["v2"]))
    x = pool(x)
    x = jax.nn.relu(bn(conv(x, params["w3"], params["b3"]),
                       params["g3"], params["be3"], params["m3"], params["v3"]))
    x = pool(x)
    B, C, T, F = x.shape
    x = jnp.transpose(x, (0, 2, 1, 3)).reshape(B, T, C * F)
    return x @ params["wf"].T + params["bf"]


# ----------------------------------- main --------------------------------------

if __name__ == "__main__":
    input_features = 16     # F (frequency bins)
    output_features = 64    # -> C1 = 4, C2 = 8, fc_in = 8 * 4 = 32
    B, T = 2, 8

    key = jax.random.PRNGKey(0)
    kp, kx = jax.random.split(key)
    params = init_params(kp, input_features, output_features)
    data = jax.random.normal(kx, (B, 1, T, input_features), jnp.float32)

    out = jax.block_until_ready(conv_stack_forward(data, params))
    ref = jax.block_until_ready(ref_forward(data, params))

    assert out.shape == (B, T, output_features)
    # Tolerance accounts for explicit bf16 operands on the MXU (f32 accumulation)
    # vs. the plain-JAX f32 reference.
    np.testing.assert_allclose(np.asarray(out), np.asarray(ref), rtol=5e-2, atol=5e-2)
    print("KERNEL_OK")
</pallas_src>

<mosaic_0001>
module attributes {stable_mosaic.version = 11 : i64} {
  func.func @_conv_stack_kernel(%arg0: i32, %arg1: memref<24x16xbf16, #tpu.memory_space<any>>, %arg2: memref<16x192xbf16, #tpu.memory_space<vmem>>, %arg3: memref<1x64xf32, #tpu.memory_space<vmem>>, %arg4: memref<64x192xbf16, #tpu.memory_space<vmem>>, %arg5: memref<1x32xf32, #tpu.memory_space<vmem>>, %arg6: memref<32x192xbf16, #tpu.memory_space<vmem>>, %arg7: memref<1x32xf32, #tpu.memory_space<vmem>>, %arg8: memref<32x128xbf16, #tpu.memory_space<vmem>>, %arg9: memref<1x128xf32, #tpu.memory_space<vmem>>, %arg10: memref<8x128xf32, #tpu.memory_space<vmem>>, %arg11: memref<16x16xbf16, #tpu.memory_space<vmem>>, %arg12: memref<1x!tpu.dma_semaphore, #tpu.memory_space<semaphore_mem>>) attributes {dimension_semantics = [#tpu.dimension_semantics<parallel>], iteration_bounds = array<i64: 2>, scalar_prefetch = 0 : i64, scratch_operands = 2 : i64, tpu.core_type = #tpu.core_type<tc>, window_params = [{}, {pipeline_mode = #tpu.pipeline_mode<synchronous>, transform_indices = @transform_1, window_bounds = array<i64: 16, 192>}, {pipeline_mode = #tpu.pipeline_mode<synchronous>, transform_indices = @transform_2, window_bounds = array<i64: 1, 64>}, {pipeline_mode = #tpu.pipeline_mode<synchronous>, transform_indices = @transform_3, window_bounds = array<i64: 64, 192>}, {pipeline_mode = #tpu.pipeline_mode<synchronous>, transform_indices = @transform_4, window_bounds = array<i64: 1, 32>}, {pipeline_mode = #tpu.pipeline_mode<synchronous>, transform_indices = @transform_5, window_bounds = array<i64: 32, 192>}, {pipeline_mode = #tpu.pipeline_mode<synchronous>, transform_indices = @transform_6, window_bounds = array<i64: 1, 32>}, {pipeline_mode = #tpu.pipeline_mode<synchronous>, transform_indices = @transform_7, window_bounds = array<i64: 32, 128>}, {pipeline_mode = #tpu.pipeline_mode<synchronous>, transform_indices = @transform_8, window_bounds = array<i64: 1, 128>}, {transform_indices = @transform_9, window_bounds = array<i64: 8, 128>}]} {
    %c8_i32 = arith.constant 8 : i32
    %0 = arith.muli %arg0, %c8_i32 : i32
    %1 = tpu.assume_multiple %0, 8 : i32
    %c0_i32 = arith.constant 0 : i32
    %c0_i32_0 = arith.constant 0 : i32
    %2 = tpu.memref_slice %arg1[%1, %c0_i32_0] : memref<24x16xbf16, #tpu.memory_space<any>> -> memref<16x16xbf16, #tpu.memory_space<any>>
    %3 = tpu.memref_slice %arg12[%c0_i32] : memref<1x!tpu.dma_semaphore, #tpu.memory_space<semaphore_mem>> -> memref<1x!tpu.dma_semaphore, #tpu.memory_space<semaphore_mem>>
    %4 = tpu.memref_squeeze %3 : memref<1x!tpu.dma_semaphore, #tpu.memory_space<semaphore_mem>> -> memref<!tpu.dma_semaphore, #tpu.memory_space<semaphore_mem>>
    tpu.enqueue_dma source(%2 : memref<16x16xbf16, #tpu.memory_space<any>>) target(%arg11 : memref<16x16xbf16, #tpu.memory_space<vmem>>) target_semaphore(%4 : memref<!tpu.dma_semaphore, #tpu.memory_space<semaphore_mem>>)
    %5 = tpu.iota {dimensions = array<i32: 0>} : vector<14x1xi32>
    %c-3_i32 = arith.constant -3 : i32
    %6 = vector.broadcast %c-3_i32 : i32 to vector<14x1xi32>
    %7 = arith.addi %6, %5 : vector<14x1xi32>
    %c0_i32_1 = arith.constant 0 : i32
    %8 = vector.broadcast %c0_i32_1 : i32 to vector<14x1xi32>
    %9 = arith.cmpi sge, %7, %8 : vector<14x1xi32>
    %c8_i32_2 = arith.constant 8 : i32
    %10 = vector.broadcast %c8_i32_2 : i32 to vector<14x1xi32>
    %11 = arith.cmpi slt, %7, %10 : vector<14x1xi32>
    %12 = arith.andi %9, %11 : vector<14x1xi1>
    %13 = arith.extui %12 : vector<14x1xi1> to vector<14x1xi32>
    %14 = arith.sitofp %13 : vector<14x1xi32> to vector<14x1xf32>
    %c0_i32_3 = arith.constant 0 : i32
    %c0_i32_4 = arith.constant 0 : i32
    %15 = tpu.memref_slice %arg1[%1, %c0_i32_4] : memref<24x16xbf16, #tpu.memory_space<any>> -> memref<16x16xbf16, #tpu.memory_space<any>>
    %16 = tpu.memref_slice %arg12[%c0_i32_3] : memref<1x!tpu.dma_semaphore, #tpu.memory_space<semaphore_mem>> -> memref<1x!tpu.dma_semaphore, #tpu.memory_space<semaphore_mem>>
    %17 = tpu.memref_squeeze %16 : memref<1x!tpu.dma_semaphore, #tpu.memory_space<semaphore_mem>> -> memref<!tpu.dma_semaphore, #tpu.memory_space<semaphore_mem>>
    tpu.wait_dma2 semaphore(%17 : memref<!tpu.dma_semaphore, #tpu.memory_space<semaphore_mem>>) src(%15 : memref<16x16xbf16, #tpu.memory_space<any>>) dst(%arg11 : memref<16x16xbf16, #tpu.memory_space<vmem>>)
    %c0 = arith.constant 0 : index
    %c0_5 = arith.constant 0 : index
    %18 = vector.load %arg11[%c0, %c0_5] : memref<16x16xbf16, #tpu.memory_space<vmem>>, vector<14x16xbf16>
    %19 = arith.truncf %14 : vector<14x1xf32> to vector<14x1xbf16>
    %20 = vector.broadcast %19 : vector<14x1xbf16> to vector<14x16xbf16>
    %21 = arith.mulf %18, %20 : vector<14x16xbf16>
    %c0_6 = arith.constant 0 : index
    %c0_7 = arith.constant 0 : index
    %22 = vector.load %arg2[%c0_6, %c0_7] : memref<16x192xbf16, #tpu.memory_space<vmem>>, vector<16x192xbf16>
    %cst = arith.constant dense<0.000000e+00> : vector<14x192xf32>
    %23 = tpu.matmul %21, %22, %cst {dimension_numbers = #tpu.dot_dimension_numbers<[1], [0], [0], [1], [0, 0, 1, 1], [], []>} : vector<14x16xbf16>, vector<16x192xbf16>, vector<14x192xf32> -> vector<14x192xf32>
    %24 = vector.extract_strided_slice %23 {offsets = [0, 0], sizes = [12, 64], strides = [1, 1]} : vector<14x192xf32> to vector<12x64xf32>
    %25 = vector.extract_strided_slice %23 {offsets = [1, 64], sizes = [12, 64], strides = [1, 1]} : vector<14x192xf32> to vector<12x64xf32>
    %26 = arith.addf %24, %25 : vector<12x64xf32>
    %27 = vector.extract_strided_slice %23 {offsets = [2, 128], sizes = [12, 64], strides = [1, 1]} : vector<14x192xf32> to vector<12x64xf32>
    %28 = arith.addf %26, %27 : vector<12x64xf32>
    %c0_8 = arith.constant 0 : index
    %c0_9 = arith.constant 0 : index
    %29 = vector.load %arg3[%c0_8, %c0_9] : memref<1x64xf32, #tpu.memory_space<vmem>>, vector<1x64xf32>
    %30 = vector.broadcast %29 : vector<1x64xf32> to vector<12x64xf32>
    %31 = arith.addf %28, %30 : vector<12x64xf32>
    %cst_10 = arith.constant 0.000000e+00 : f32
    %32 = vector.broadcast %cst_10 : f32 to vector<12x64xf32>
    %33 = arith.maximumf %31, %32 : vector<12x64xf32>
    %34 = vector.extract_strided_slice %14 {offsets = [1, 0], sizes = [12, 1], strides = [1, 1]} : vector<14x1xf32> to vector<12x1xf32>
    %35 = vector.broadcast %34 : vector<12x1xf32> to vector<12x64xf32>
    %36 = arith.mulf %33, %35 : vector<12x64xf32>
    %37 = arith.truncf %36 : vector<12x64xf32> to vector<12x64xbf16>
    %c0_11 = arith.constant 0 : index
    %c0_12 = arith.constant 0 : index
    %38 = vector.load %arg4[%c0_11, %c0_12] : memref<64x192xbf16, #tpu.memory_space<vmem>>, vector<64x192xbf16>
    %cst_13 = arith.constant dense<0.000000e+00> : vector<12x192xf32>
    %39 = tpu.matmul %37, %38, %cst_13 {dimension_numbers = #tpu.dot_dimension_numbers<[1], [0], [0], [1], [0, 0, 1, 1], [], []>} : vector<12x64xbf16>, vector<64x192xbf16>, vector<12x192xf32> -> vector<12x192xf32>
    %40 = vector.extract_strided_slice %39 {offsets = [0, 0], sizes = [10, 64], strides = [1, 1]} : vector<12x192xf32> to vector<10x64xf32>
    %41 = vector.extract_strided_slice %39 {offsets = [1, 64], sizes = [10, 64], strides = [1, 1]} : vector<12x192xf32> to vector<10x64xf32>
    %42 = arith.addf %40, %41 : vector<10x64xf32>
    %43 = vector.extract_strided_slice %39 {offsets = [2, 128], sizes = [10, 64], strides = [1, 1]} : vector<12x192xf32> to vector<10x64xf32>
    %44 = arith.addf %42, %43 : vector<10x64xf32>
    %45 = vector.extract_strided_slice %44 {offsets = [0, 0], sizes = [10, 32], strides = [1, 1]} : vector<10x64xf32> to vector<10x32xf32>
    %46 = vector.extract_strided_slice %44 {offsets = [0, 32], sizes = [10, 32], strides = [1, 1]} : vector<10x64xf32> to vector<10x32xf32>
    %47 = arith.maximumf %45, %46 : vector<10x32xf32>
    %c0_14 = arith.constant 0 : index
    %c0_15 = arith.constant 0 : index
    %48 = vector.load %arg5[%c0_14, %c0_15] : memref<1x32xf32, #tpu.memory_space<vmem>>, vector<1x32xf32>
    %49 = vector.broadcast %48 : vector<1x32xf32> to vector<10x32xf32>
    %50 = arith.addf %47, %49 : vector<10x32xf32>
    %cst_16 = arith.constant 0.000000e+00 : f32
    %51 = vector.broadcast %cst_16 : f32 to vector<10x32xf32>
    %52 = arith.maximumf %50, %51 : vector<10x32xf32>
    %53 = vector.extract_strided_slice %14 {offsets = [2, 0], sizes = [10, 1], strides = [1, 1]} : vector<14x1xf32> to vector<10x1xf32>
    %54 = vector.broadcast %53 : vector<10x1xf32> to vector<10x32xf32>
    %55 = arith.mulf %52, %54 : vector<10x32xf32>
    %56 = arith.truncf %55 : vector<10x32xf32> to vector<10x32xbf16>
    %c0_17 = arith.constant 0 : index
    %c0_18 = arith.constant 0 : index
    %57 = vector.load %arg6[%c0_17, %c0_18] : memref<32x192xbf16, #tpu.memory_space<vmem>>, vector<32x192xbf16>
    %cst_19 = arith.constant dense<0.000000e+00> : vector<10x192xf32>
    %58 = tpu.matmul %56, %57, %cst_19 {dimension_numbers = #tpu.dot_dimension_numbers<[1], [0], [0], [1], [0, 0, 1, 1], [], []>} : vector<10x32xbf16>, vector<32x192xbf16>, vector<10x192xf32> -> vector<10x192xf32>
    %59 = vector.extract_strided_slice %58 {offsets = [0, 0], sizes = [8, 64], strides = [1, 1]} : vector<10x192xf32> to vector<8x64xf32>
    %60 = vector.extract_strided_slice %58 {offsets = [1, 64], sizes = [8, 64], strides = [1, 1]} : vector<10x192xf32> to vector<8x64xf32>
    %61 = arith.addf %59, %60 : vector<8x64xf32>
    %62 = vector.extract_strided_slice %58 {offsets = [2, 128], sizes = [8, 64], strides = [1, 1]} : vector<10x192xf32> to vector<8x64xf32>
    %63 = arith.addf %61, %62 : vector<8x64xf32>
    %64 = vector.extract_strided_slice %63 {offsets = [0, 0], sizes = [8, 32], strides = [1, 1]} : vector<8x64xf32> to vector<8x32xf32>
    %65 = vector.extract_strided_slice %63 {offsets = [0, 32], sizes = [8, 32], strides = [1, 1]} : vector<8x64xf32> to vector<8x32xf32>
    %66 = arith.maximumf %64, %65 : vector<8x32xf32>
    %c0_20 = arith.constant 0 : index
    %c0_21 = arith.constant 0 : index
    %67 = vector.load %arg7[%c0_20, %c0_21] : memref<1x32xf32, #tpu.memory_space<vmem>>, vector<1x32xf32>
    %68 = vector.broadcast %67 : vector<1x32xf32> to vector<8x32xf32>
    %69 = arith.addf %66, %68 : vector<8x32xf32>
    %cst_22 = arith.constant 0.000000e+00 : f32
    %70 = vector.broadcast %cst_22 : f32 to vector<8x32xf32>
    %71 = arith.maximumf %69, %70 : vector<8x32xf32>
    %72 = arith.truncf %71 : vector<8x32xf32> to vector<8x32xbf16>
    %c0_23 = arith.constant 0 : index
    %c0_24 = arith.constant 0 : index
    %73 = vector.load %arg8[%c0_23, %c0_24] : memref<32x128xbf16, #tpu.memory_space<vmem>>, vector<32x128xbf16>
    %cst_25 = arith.constant dense<0.000000e+00> : vector<8x128xf32>
    %74 = tpu.matmul %72, %73, %cst_25 {dimension_numbers = #tpu.dot_dimension_numbers<[1], [0], [0], [1], [0, 0, 1, 1], [], []>} : vector<8x32xbf16>, vector<32x128xbf16>, vector<8x128xf32> -> vector<8x128xf32>
    %c0_26 = arith.constant 0 : index
    %c0_27 = arith.constant 0 : index
    %75 = vector.load %arg9[%c0_26, %c0_27] : memref<1x128xf32, #tpu.memory_space<vmem>>, vector<1x128xf32>
    %76 = vector.broadcast %75 : vector<1x128xf32> to vector<8x128xf32>
    %77 = arith.addf %74, %76 : vector<8x128xf32>
    %c0_28 = arith.constant 0 : index
    %c0_29 = arith.constant 0 : index
    %78 = vector.load %arg10[%c0_28, %c0_29] : memref<8x128xf32, #tpu.memory_space<vmem>>, vector<8x128xf32>
    tpu.vector_store %arg10[%c0_28, %c0_29], %77 {strides = array<i32>} : memref<8x128xf32, #tpu.memory_space<vmem>>, vector<8x128xf32>,
    return
  }
  func.func @transform_1(%arg0: i32) -> (i32, i32) {
    %c0_i32 = arith.constant 0 : i32
    %c0_i32_0 = arith.constant 0 : i32
    %c0_i32_1 = arith.constant 0 : i32
    return %c0_i32, %c0_i32_0 : i32, i32
  }
  func.func @transform_2(%arg0: i32) -> (i32, i32) {
    %c0_i32 = arith.constant 0 : i32
    %c0_i32_0 = arith.constant 0 : i32
    %c0_i32_1 = arith.constant 0 : i32
    return %c0_i32, %c0_i32_0 : i32, i32
  }
  func.func @transform_3(%arg0: i32) -> (i32, i32) {
    %c0_i32 = arith.constant 0 : i32
    %c0_i32_0 = arith.constant 0 : i32
    %c0_i32_1 = arith.constant 0 : i32
    return %c0_i32, %c0_i32_0 : i32, i32
  }
  func.func @transform_4(%arg0: i32) -> (i32, i32) {
    %c0_i32 = arith.constant 0 : i32
    %c0_i32_0 = arith.constant 0 : i32
    %c0_i32_1 = arith.constant 0 : i32
    return %c0_i32, %c0_i32_0 : i32, i32
  }
  func.func @transform_5(%arg0: i32) -> (i32, i32) {
    %c0_i32 = arith.constant 0 : i32
    %c0_i32_0 = arith.constant 0 : i32
    %c0_i32_1 = arith.constant 0 : i32
    return %c0_i32, %c0_i32_0 : i32, i32
  }
  func.func @transform_6(%arg0: i32) -> (i32, i32) {
    %c0_i32 = arith.constant 0 : i32
    %c0_i32_0 = arith.constant 0 : i32
    %c0_i32_1 = arith.constant 0 : i32
    return %c0_i32, %c0_i32_0 : i32, i32
  }
  func.func @transform_7(%arg0: i32) -> (i32, i32) {
    %c0_i32 = arith.constant 0 : i32
    %c0_i32_0 = arith.constant 0 : i32
    %c0_i32_1 = arith.constant 0 : i32
    return %c0_i32, %c0_i32_0 : i32, i32
  }
  func.func @transform_8(%arg0: i32) -> (i32, i32) {
    %c0_i32 = arith.constant 0 : i32
    %c0_i32_0 = arith.constant 0 : i32
    %c0_i32_1 = arith.constant 0 : i32
    return %c0_i32, %c0_i32_0 : i32, i32
  }
  func.func @transform_9(%arg0: i32) -> (i32, i32) {
    %c0_i32 = arith.constant 0 : i32
    %c0_i32_0 = arith.constant 0 : i32
    return %arg0, %c0_i32 : i32, i32
  }
}

</mosaic_0001>

<bundles_post_ra>
// kernel: tpu_custom_call.1
= control target key start
LH: loop header
LB: loop body
LE: loop exit
PB: predicated region body
PF: predicated region fallthrough
CT: control target
= control target key end

     0   :  { %s1986_s0 = inlined_call_operand.hbm [shape: bf16[24,16], index: 0, kind: input, shape index: {}]   ;;  %s1987_s1 = inlined_call_operand.hbm [shape: bf16[16,192], index: 1, kind: input, shape index: {}]   ;;  %s1988_s2 = inlined_call_operand.hbm [shape: f32[1,64], index: 2, kind: input, shape index: {}]   ;;  %s1989_s3 = inlined_call_operand.hbm [shape: bf16[64,192], index: 3, kind: input, shape index: {}]   ;;  %s1990_s4 = inlined_call_operand.hbm [shape: f32[1,32], index: 4, kind: input, shape index: {}]   ;;  %s1991_s5 = inlined_call_operand.hbm [shape: bf16[32,192], index: 5, kind: input, shape index: {}]   ;;  %s1992_s6 = inlined_call_operand.hbm [shape: f32[1,32], index: 6, kind: input, shape index: {}]   ;;  %s1993_s7 = inlined_call_operand.hbm [shape: bf16[32,128], index: 7, kind: input, shape index: {}]   ;;  %s1994_s8 = inlined_call_operand.hbm [shape: f32[1,128], index: 8, kind: input, shape index: {}]   ;;  %s1995_s9 = inlined_call_operand.hbm [shape: f32[16,128], index: 9, kind: output, shape index: {}]  }
   0x1   :  { %2002 = sst [smem:[#allocation33_spill]] %s1988_s2 }
   0x2   :  { %2003 = sst [smem:[#allocation34_spill]] %s1990_s4 }
   0x3   :  { %14 = vsyncpa [#allocation5], 0 }
   0x4   :  { %15 = vsyncpa [#allocation8], 0 }
   0x5   :  { %16 = vsyncpa [#allocation11], 0 }
   0x6   :  { %17 = vsyncpa [#allocation14], 0 }
   0x7   :  { %18 = vsyncpa [#allocation17], 0 }
   0x8   :  { %19 = vsyncpa [#allocation6], 0 }
   0x9   :  { %21 = vsyncpa [#allocation6 + $0x1], 0  ;;  %s1620_s30 = smov 0   ;;  %s1622_s10 = smov 0  }
   0xa   :  { %s1624_s11 = smov 0   ;;  %s1626_s12 = smov 0  }
   0xb LB: > { %2004 = sst [smem:[#allocation30_spill]] %s1545_s11  ;;  %s1641_s13 = sadd.s32 4294967295, %s1549_s12   ;;  %s1549_s12 = sphi %s1626_s12, %s2027_s12   ;;  %s1545_s11 = sphi %s1624_s11, %s2029_s11   ;;  %s1541_s10 = sphi %s1622_s10, %s2031_s10   ;;  %s1537_s30 = sphi %s1620_s30, %s2030_s30  }
   0xc   : > { %s1000_s14 = sadd.s32 4294967294, %s1549_s12   ;;  %s1645_s15 = sadd.s32 1, %s1549_s12  }
   0xd   : > { %2005 = sst [smem:[#allocation31_spill]] %s1645_s15  ;;  %s202_s16 = sadd.s32 1, %s1545_s11 }
   0xe   : > { %s199_s17 = ssub.s32 %s1549_s12, %s1645_s15  ;;  %p212_p0 = scmp.ne.s32.totalorder %s1545_s11, %s1541_s10 }
   0xf   : > { %p200_p1 = scmp.eq.s32.totalorder %s199_s17, 0  ;;  %p213_p2 = scmp.eq.s32.totalorder %s1641_s13, 1 }
  0x10   : > { %p218_p3 = scmp.ne.s32.totalorder %s1541_s10, %s1537_s30  ;;  %p219_p4 = scmp.eq.s32.totalorder %s1000_s14, 1 }
  0x11   : > { %s1656_s18 = scalar_select %p200_p1, %s1545_s11, %s202_s16  }
  0x12   : > { %p1658_p5 = por %p213_p2, %p212_p0  ;;  %p1662_p6 = por %p219_p4, %p218_p3 }
  0x13   : > { %2006 = sst [smem:[#allocation32_spill]] %s1656_s18  ;;  %p1001_p7 = scmp.ge.s32.totalorder %s1549_s12, 1 }
  0x14   : > { %s2007_s19 = scalar_select %p1658_p5, 1, 0 }
  0x15   : > { %s2008_s20 = scalar_select %p1662_p6, 1, 0 }
  0x16   : > { %p226_p8 = scmp.lt.s32.totalorder %s1549_s12, 3  ;;  %p1996_p9 = scmp.eq.s32.totalorder %s1641_s13, 0 }
  0x17   : > { %s1551_s22 = smov [#allocation7]   ;;  %s1552_s24 = smov [#allocation10]  }
  0x18   : > { %p1669_p10 = pnand %p1001_p7, %p226_p8  ;;  %s252_s23 = sshll.u32 %s1551_s22, 4  ;;  %s253_s23 = int_to_ptr.vmem [resolvable:$true] %s252_s23 }
  0x19   : > { %s276_s25 = sshll.u32 %s1552_s24, 4  ;;  %s1553_s27 = smov [#allocation13]   ;;  %s1681_s25 = int_to_ptr.vmem [resolvable:$true] %s276_s25 }
  0x1a   : > { %s2009_s21 = scalar_select %p1669_p10, 1, 0 }
  0x1b   : > { %p1098_p11 = pneg %p1669_p10  ;;  %s300_s28 = sshll.u32 %s1553_s27, 4  ;;  %s1683_s28 = int_to_ptr.vmem [resolvable:$true] %s300_s28 }
  0x1c   : > { %s2011_s2 = sld [smem:[#allocation33_spill]] }
  0x1d   : > { %p1677_p12 = pnand %p1996_p9, %p1098_p11 }
  0x1f   : > { %p1693_p0 = pneg %p1677_p12 }
  0x22   : > { %s1217_s16 = scalar_lea.hbm %s2011_s2, 16 }
  0x23   : > { %p1218_p13 = scmp.ne.s32.totalorder %s2011_s2, %s1217_s16  ;;  %p1224_p3 = scmp.lt.u32.totalorder %s1217_s16, %s2011_s2 }
  0x25   : > { %p1220_p1 = pnand %p1693_p0, %p1218_p13 }
  0x27   : > { %p1221_p2 = pneg %p1220_p1 }
  0x29   : > { %p1226_p4 = pnand %p1224_p3, %p1221_p2 }
  0x2b   : > { %1229 = shalt.err (!%p1226_p4)
}
  0x2c   : > { %s1230_s29 = scalar_lea.vmem %s253_s23, 16  ;;  %s1237_s14 = scalar_lea.vmem %s253_s23, 32 }
  0x2d   : > { %p1231_p7 = scmp.ne.s32.totalorder %s253_s23, %s1230_s29  ;;  %p1238_p9 = scmp.lt.s32.totalorder %s253_s23, %s253_s23 }
  0x2e   : > { %p1239_p6 = scmp.lt.s32.totalorder %s1237_s14, %s1230_s29 }
  0x2f   : > { %p1233_p8 = pnand %p1231_p7, %p1693_p0 }
  0x30   : > { %p1240_p5 = por %p1239_p6, %p1238_p9 }
  0x31   : > { %p1234_p11 = pneg %p1233_p8 }
  0x33   : > { %p1241_p10 = pnand %p1240_p5, %p1234_p11 }
  0x35   : > { %1244 = shalt.err (!%p1241_p10)
}
  0x36   : > { %1104 = dma.hbm_to_vmem [thread:$0]  (!%p1677_p12), %s2011_s2, 16, %s253_s23, [#allocation8]  }
  0x37   : > { %s2013_s4 = sld [smem:[#allocation34_spill]] }
  0x3d   : > { %s1245_s27 = scalar_lea.hbm %s2013_s4, 16 }
  0x3e   : > { %p1246_p13 = scmp.ne.s32.totalorder %s2013_s4, %s1245_s27  ;;  %p1252_p5 = scmp.lt.u32.totalorder %s1245_s27, %s2013_s4 }
  0x40   : > { %p1248_p1 = pnand %p1246_p13, %p1693_p0 }
  0x42   : > { %p1249_p6 = pneg %p1248_p1 }
  0x44   : > { %p1254_p9 = pnand %p1252_p5, %p1249_p6 }
  0x46   : > { %1257 = shalt.err (!%p1254_p9)
}
  0x47   : > { %s1258_s23 = scalar_lea.vmem %s1681_s25, 16  ;;  %s1265_s11 = scalar_lea.vmem %s1681_s25, 32 }
  0x48   : > { %p1259_p10 = scmp.ne.s32.totalorder %s1681_s25, %s1258_s23  ;;  %p1266_p4 = scmp.lt.s32.totalorder %s1681_s25, %s1681_s25 }
  0x49   : > { %p1267_p7 = scmp.lt.s32.totalorder %s1265_s11, %s1258_s23 }
  0x4a   : > { %p1261_p2 = pnand %p1259_p10, %p1693_p0 }
  0x4b   : > { %p1268_p8 = por %p1267_p7, %p1266_p4 }
  0x4c   : > { %p1262_p3 = pneg %p1261_p2 }
  0x4e   : > { %p1269_p11 = pnand %p1268_p8, %p1262_p3 }
  0x50   : > { %1272 = shalt.err (!%p1269_p11)
}
  0x51   : > { %1110 = dma.hbm_to_vmem [thread:$0]  (!%p1677_p12), %s2013_s4, 16, %s1681_s25, [#allocation11]  }
  0x52   : > { %s1273_s16 = scalar_lea.hbm %s1992_s6, 16 }
  0x53   : > { %p1274_p13 = scmp.ne.s32.totalorder %s1992_s6, %s1273_s16  ;;  %p1280_p5 = scmp.lt.u32.totalorder %s1273_s16, %s1992_s6 }
  0x55   : > { %p1276_p1 = pnand %p1274_p13, %p1693_p0 }
  0x57   : > { %p1277_p6 = pneg %p1276_p1 }
  0x59   : > { %p1282_p9 = pnand %p1280_p5, %p1277_p6 }
  0x5b   : > { %1285 = shalt.err (!%p1282_p9)
}
  0x5c   : > { %s1286_s25 = scalar_lea.vmem %s1683_s28, 16  ;;  %s1293_s11 = scalar_lea.vmem %s1683_s28, 32 }
  0x5d   : > { %p1287_p10 = scmp.ne.s32.totalorder %s1683_s28, %s1286_s25  ;;  %p1294_p4 = scmp.lt.s32.totalorder %s1683_s28, %s1683_s28 }
  0x5e   : > { %p1295_p7 = scmp.lt.s32.totalorder %s1293_s11, %s1286_s25 }
  0x5f   : > { %p1289_p2 = pnand %p1287_p10, %p1693_p0 }
  0x60   : > { %p1296_p8 = por %p1295_p7, %p1294_p4 }
  0x61   : > { %p1290_p3 = pneg %p1289_p2 }
  0x63   : > { %p1297_p11 = pnand %p1296_p8, %p1290_p3 }
  0x65   : > { %1300 = shalt.err (!%p1297_p11)
}
  0x66   : > { %1116 = dma.hbm_to_vmem [thread:$0]  (!%p1677_p12), %s1992_s6, 16, %s1683_s28, [#allocation14]  }
  0x67   : > { %s1554_s22 = smov [#allocation4]   ;;  %s1301_s29 = scalar_lea.hbm %s1987_s1, 256 }
  0x68   : > { %s238_s18 = sshll.u32 %s1554_s22, 4  ;;  %p1302_p13 = scmp.ne.s32.totalorder %s1987_s1, %s1301_s29  ;;  %s239_s18 = int_to_ptr.vmem [resolvable:$true] %s238_s18 }
  0x69   : > { %p1308_p5 = scmp.lt.u32.totalorder %s1301_s29, %s1987_s1 }
  0x6a   : > { %p1304_p1 = pnand %p1302_p13, %p1693_p0 }
  0x6c   : > { %p1305_p6 = pneg %p1304_p1 }
  0x6e   : > { %p1310_p9 = pnand %p1308_p5, %p1305_p6 }
  0x70   : > { %1313 = shalt.err (!%p1310_p9)
}
  0x71   : > { %s1314_s28 = scalar_lea.vmem %s239_s18, 256  ;;  %p1322_p4 = scmp.lt.s32.totalorder %s239_s18, %s239_s18 }
  0x72   : > { %p1315_p10 = scmp.ne.s32.totalorder %s239_s18, %s1314_s28  ;;  %p1323_p7 = scmp.lt.s32.totalorder %s1314_s28, %s1314_s28 }
  0x74   : > { %p1317_p2 = pnand %p1315_p10, %p1693_p0  ;;  %p1324_p8 = por %p1323_p7, %p1322_p4 }
  0x76   : > { %p1318_p3 = pneg %p1317_p2 }
  0x78   : > { %p1325_p11 = pnand %p1324_p8, %p1318_p3 }
  0x7a   : > { %1328 = shalt.err (!%p1325_p11)
}
  0x7b   : > { %s1555_s15 = smov 128   ;;  %s1556_s17 = smov 8  }
  0x7c   : > { %1101 = dma.hbm_to_vmem [thread:$0]  (!%p1677_p12), %s1987_s1, 256, %s239_s18, [#allocation5], %s1555_s15, %s1555_s15, %s1556_s17  }
  0x7d   : > { %s1557_s27 = smov [#allocation9]   ;;  %s1558_s14 = smov [#allocation12]  }
  0x7e   : > { %s262_s29 = sshll.u32 %s1557_s27, 4  ;;  %s286_s23 = sshll.u32 %s1558_s14, 4  ;;  %s263_s29 = int_to_ptr.vmem [resolvable:$true] %s262_s29  ;;  %s1778_s23 = int_to_ptr.vmem [resolvable:$true] %s286_s23 }
  0x7f   : > { %s1329_s28 = scalar_lea.hbm %s1989_s3, 1024 }
  0x80   : > { %p1330_p13 = scmp.ne.s32.totalorder %s1989_s3, %s1329_s28  ;;  %p1336_p5 = scmp.lt.u32.totalorder %s1329_s28, %s1989_s3 }
  0x82   : > { %p1332_p1 = pnand %p1330_p13, %p1693_p0 }
  0x84   : > { %p1333_p6 = pneg %p1332_p1 }
  0x86   : > { %p1338_p9 = pnand %p1336_p5, %p1333_p6 }
  0x88   : > { %1341 = shalt.err (!%p1338_p9)
}
  0x89   : > { %s1342_s16 = scalar_lea.vmem %s263_s29, 1024  ;;  %p1350_p4 = scmp.lt.s32.totalorder %s263_s29, %s263_s29 }
  0x8a   : > { %p1343_p10 = scmp.ne.s32.totalorder %s263_s29, %s1342_s16  ;;  %p1351_p7 = scmp.lt.s32.totalorder %s1342_s16, %s1342_s16 }
  0x8c   : > { %p1345_p2 = pnand %p1343_p10, %p1693_p0  ;;  %p1352_p8 = por %p1351_p7, %p1350_p4 }
  0x8e   : > { %p1346_p3 = pneg %p1345_p2 }
  0x90   : > { %p1353_p11 = pnand %p1352_p8, %p1346_p3 }
  0x92   : > { %1356 = shalt.err (!%p1353_p11)
}
  0x93   : > { %1107 = dma.hbm_to_vmem [thread:$0]  (!%p1677_p12), %s1989_s3, 1024, %s263_s29, [#allocation8], %s1555_s15, %s1555_s15, %s1556_s17  }
  0x94   : > { %s1357_s25 = scalar_lea.hbm %s1991_s5, 512 }
  0x95   : > { %p1358_p13 = scmp.ne.s32.totalorder %s1991_s5, %s1357_s25  ;;  %p1364_p5 = scmp.lt.u32.totalorder %s1357_s25, %s1991_s5 }
  0x97   : > { %p1360_p1 = pnand %p1358_p13, %p1693_p0 }
  0x99   : > { %p1361_p6 = pneg %p1360_p1 }
  0x9b   : > { %p1366_p9 = pnand %p1364_p5, %p1361_p6 }
  0x9d   : > { %1369 = shalt.err (!%p1366_p9)
}
  0x9e   : > { %s1370_s29 = scalar_lea.vmem %s1778_s23, 512  ;;  %p1378_p4 = scmp.lt.s32.totalorder %s1778_s23, %s1778_s23 }
  0x9f   : > { %p1371_p10 = scmp.ne.s32.totalorder %s1778_s23, %s1370_s29  ;;  %p1379_p7 = scmp.lt.s32.totalorder %s1370_s29, %s1370_s29 }
  0xa1   : > { %p1373_p2 = pnand %p1371_p10, %p1693_p0  ;;  %p1380_p8 = por %p1379_p7, %p1378_p4 }
  0xa3   : > { %p1374_p3 = pneg %p1373_p2 }
  0xa5   : > { %p1381_p11 = pnand %p1380_p8, %p1374_p3 }
  0xa7   : > { %1384 = shalt.err (!%p1381_p11)
}
  0xa8   : > { %1113 = dma.hbm_to_vmem [thread:$0]  (!%p1677_p12), %s1991_s5, 512, %s1778_s23, [#allocation11], %s1555_s15, %s1555_s15, %s1556_s17  }
  0xa9   : > { %s1559_s4 = smov [#allocation15]   ;;  %s1385_s11 = scalar_lea.hbm %s1993_s7, 256 }
  0xaa   : > { %s310_s27 = sshll.u32 %s1559_s4, 4  ;;  %p1386_p13 = scmp.ne.s32.totalorder %s1993_s7, %s1385_s11  ;;  %s311_s27 = int_to_ptr.vmem [resolvable:$true] %s310_s27 }
  0xab   : > { %p1392_p5 = scmp.lt.u32.totalorder %s1385_s11, %s1993_s7 }
  0xac   : > { %p1388_p1 = pnand %p1386_p13, %p1693_p0 }
  0xae   : > { %p1389_p6 = pneg %p1388_p1 }
  0xb0   : > { %p1394_p9 = pnand %p1392_p5, %p1389_p6 }
  0xb2   : > { %1397 = shalt.err (!%p1394_p9)
}
  0xb3   : > { %s1398_s15 = scalar_lea.vmem %s311_s27, 256  ;;  %p1406_p4 = scmp.lt.s32.totalorder %s311_s27, %s311_s27 }
  0xb4   : > { %p1399_p10 = scmp.ne.s32.totalorder %s311_s27, %s1398_s15  ;;  %p1407_p7 = scmp.lt.s32.totalorder %s1398_s15, %s1398_s15 }
  0xb6   : > { %p1401_p2 = pnand %p1399_p10, %p1693_p0  ;;  %p1408_p8 = por %p1407_p7, %p1406_p4 }
  0xb8   : > { %p1402_p3 = pneg %p1401_p2 }
  0xba   : > { %p1409_p11 = pnand %p1408_p8, %p1402_p3 }
  0xbc   : > { %1412 = shalt.err (!%p1409_p11)
}
  0xbd   : > { %s1560_s17 = smov 64   ;;  %s1561_s23 = smov 4  }
  0xbe   : > { %1119 = dma.hbm_to_vmem [thread:$0]  (!%p1677_p12), %s1993_s7, 256, %s311_s27, [#allocation14], %s1560_s17, %s1560_s17, %s1561_s23  }
  0xbf   : > { %s1562_s4 = smov [#allocation16]   ;;  %s1413_s28 = scalar_lea.hbm %s1994_s8, 16 }
  0xc0   : > { %s324_s14 = sshll.u32 %s1562_s4, 4  ;;  %p1414_p13 = scmp.ne.s32.totalorder %s1994_s8, %s1413_s28  ;;  %s325_s14 = int_to_ptr.vmem [resolvable:$true] %s324_s14 }
  0xc1   : > { %p1420_p5 = scmp.lt.u32.totalorder %s1413_s28, %s1994_s8 }
  0xc2   : > { %p1416_p1 = pnand %p1414_p13, %p1693_p0 }
  0xc4   : > { %p1417_p6 = pneg %p1416_p1 }
  0xc6   : > { %p1422_p9 = pnand %p1420_p5, %p1417_p6 }
  0xc8   : > { %1425 = shalt.err (!%p1422_p9)
}
  0xc9   : > { %s1426_s27 = scalar_lea.vmem %s325_s14, 16  ;;  %s1433_s17 = scalar_lea.vmem %s325_s14, 32 }
  0xca   : > { %p1427_p10 = scmp.ne.s32.totalorder %s325_s14, %s1426_s27  ;;  %p1434_p4 = scmp.lt.s32.totalorder %s325_s14, %s325_s14 }
  0xcb   : > { %p1435_p7 = scmp.lt.s32.totalorder %s1433_s17, %s1426_s27 }
  0xcc   : > { %p1429_p2 = pnand %p1427_p10, %p1693_p0 }
  0xcd   : > { %p1436_p8 = por %p1435_p7, %p1434_p4 }
  0xce   : > { %p1430_p3 = pneg %p1429_p2 }
  0xd0   : > { %p1437_p11 = pnand %p1436_p8, %p1430_p3 }
  0xd2   : > { %1440 = shalt.err (!%p1437_p11)
}
  0xd3   : > { %1122 = dma.hbm_to_vmem [thread:$0]  (!%p1677_p12), %s1994_s8, 16, %s325_s14, [#allocation17]  }
  0xd4   : > { %p2014_p13 = scmp.ne.s32.totalorder %s2009_s21, 0 }
  0xd5   : > { %p2015_p1 = scmp.eq.s32.totalorder (!%p2014_p13), %s1641_s13, 0 }
  0xd6   : > { %337 = sbr.rel (%p2014_p13) target bundleno = 1769 (0x6e9), region = 52 }
  0xdd   : > { %1510 = dma.done.wait (%p2015_p1), [#allocation5], 256   ;;  %p2016_p0 = pmov %p2015_p1 }
  0xdf   : > { %1512 = vsyncadd (%p2016_p0), [#allocation5], 4294967040  ;;  %p2017_p6 = pmov %p2016_p0 }
  0xe0   : > { %p2018_p5 = pmov %p2016_p0 }
  0xe1   : > { %1514 = dma.done.wait (%p2017_p6), [#allocation8], 1040  }
  0xe2   : > { %1516 = vsyncadd (%p2018_p5), [#allocation8], 4294966256  ;;  %p2019_p9 = pmov %p2016_p0 }
  0xe3   : > { %p2020_p12 = pmov %p2016_p0 }
  0xe4   : > { %1518 = dma.done.wait (%p2019_p9), [#allocation11], 528  }
  0xe5   : > { %1520 = vsyncadd (%p2020_p12), [#allocation11], 4294966768  ;;  %p2021_p10 = pmov %p2016_p0 }
  0xe6   : > { %p2022_p2 = pmov %p2016_p0 }
  0xe7   : > { %1522 = dma.done.wait (%p2021_p10), [#allocation14], 272  }
  0xe8   : > { %1524 = vsyncadd (%p2022_p2), [#allocation14], 4294967024  ;;  %p2023_p3 = pmov %p2016_p0 }
  0xe9   : > { %p2024_p4 = pmov %p2016_p0 }
  0xea   : > { %1526 = dma.done.wait (%p2023_p3), [#allocation17], 16  }
  0xeb   : > { %1528 = vsyncadd (%p2024_p4), [#allocation17], 4294967280  ;;  %s391_s21 = sand.u32 1, %s1541_s10   ;;  %s1020_s26 = sshll.u32 %s1641_s13, 3  ;;  %v411_v0 = vlaneseq }
  0xec   : > { %s1889_s24 = sshll.u32 %s391_s21, 3  ;;  %s396_s2 = sshra.s32 %s1020_s26, 3 }
  0xed   : > { %s1021_s4 = sshll.u32 %s396_s2, 6  ;;  %v412_v1 = vshrl.u32 %v411_v0, 7  ;;  %s1563_s28 = smov [#allocation2]  }
  0xee   : > { %s399_s11 = scalar_lea.hbm %s1986_s0, %s1021_s4  ;;  %s407_s22 = sshll.u32 %s1563_s28, 4  ;;  %s408_s22 = int_to_ptr.vmem [resolvable:$true] %s407_s22 }
  0xef   : > { %v413_v2 = vadd.s32 8, %v412_v1  ;;  %v414_v3 = vadd.s32 4294967293, %v412_v1  ;;  %s1441_s18 = scalar_lea.hbm %s399_s11, 128  ;;  %s1443_s27 = scalar_lea.hbm %s1986_s0, 192 }
  0xf0   : > { %p1442_p7 = scmp.ne.s32.totalorder %s399_s11, %s1441_s18  ;;  %p1444_p8 = scmp.lt.u32.totalorder %s399_s11, %s1986_s0 }
  0xf1   : > { %p1445_p11 = scmp.lt.u32.totalorder %s1443_s27, %s1441_s18  ;;  %p1447_p1 = scmp.lt.u32.totalorder %s1441_s18, %s399_s11 }
  0xf3   : > { %p1446_p13 = por %p1445_p11, %p1444_p8 }
  0xf5   : > { %p1448_p0 = por %p1447_p1, %p1446_p13 }
  0xf7   : > { %p1449_p6 = pnand %p1448_p0, %p1442_p7 }
  0xf9   : > { %1452 = shalt.err (!%p1449_p6)  }
  0xfa   : > { %s1453_s16 = scalar_lea.vmem %s408_s22, 128  ;;  %p1458_p9 = scmp.lt.s32.totalorder %s408_s22, %s408_s22 }
  0xfb   : > { %p1454_p5 = scmp.ne.s32.totalorder %s408_s22, %s1453_s16  ;;  %p1459_p12 = scmp.lt.s32.totalorder %s1453_s16, %s1453_s16 }
  0xfd   : > { %p1460_p10 = por %p1459_p12, %p1458_p9 }
  0xff   : > { %p1461_p2 = pnand %p1460_p10, %p1454_p5 }
 0x101   : > { %1464 = shalt.err (!%p1461_p2)  }
 0x102   : > { %410 = dma.hbm_to_vmem [thread:$0]  %s399_s11, 128, %s408_s22, [#allocation3]  ;;  %v415_v4 = vadd.s32 4294967293, %v413_v2  ;;  %vm416_vm0 = vcmp.ge.s32.totalorder %v414_v3, 0  ;;  %v1564_v5 = vmov 0.0  }
 0x103   : > { %v1901_v6 = vsel %vm416_vm0, 1.0, %v1564_v5  ;;  %s393_s26 = scalar_lea.vmem [#allocation18], %s1889_s24 }
 0x104   : > { %vm419_vm1 = vcmp.lt.s32.totalorder %v415_v4, 8 }
 0x105   : > { %v1904_v7 = vsel %vm419_vm1, 1.0, %v1564_v5 }
 0x106   : > { %1529 = dma.done.wait [#allocation3], 128 }
 0x107   : > { %1530 = vsyncadd [#allocation3], 4294967168  ;;  %v1565_v8 = vmov 0   ;;  %v431_v9 = vpack.c.bf16 %v1904_v7, %v1901_v6  ;;  %v1194_v10 = vld [vmem:[#allocation4 + $0x4] ss:$8 sps:$4 sm:$0xff]   ;;  %vm445_vm2 = vcmask 130048  }
 0x108   : > { %481 = vmatprep.mubr.bf16.mxu0 %v1565_v8  ;;  %621 = vmatprep.mubr.bf16.mxu1 %v1565_v8  ;;  %v1196_v11 = vld [vmem:[#allocation4] ss:$8 sps:$4 sm:$0xff]   ;;  %v430_v12 = vld [vmem:[#allocation2] sm:$0x7f]  ;;  %vm494_vm3 = vcmask 1046528   ;;  %vm508_vm4 = vcmask 1045504  }
 0x109   : > { %449 = vmatprep.subr.bf16.mxu0 %v1194_v10  ;;  %v432_v13 = vmul.bf16 %v431_v9, %v430_v12  ;;  %v1197_v14 = vld [vmem:[#allocation9 + $0x4] ss:$8 sps:$4 sm:$0xff]   ;;  %v1199_v15 = vld [vmem:[#allocation9] ss:$8 sps:$4 sm:$0xff]   ;;  %v1200_v16 = vld [vmem:[#allocation9 + $0x14] ss:$8 sps:$4 sm:$0xff]  }
 0x10a   : > { %450 = vmatpush1.bf16.msra.mxu0 %v1196_v11  ;;  %589 = vmatprep.subr.bf16.mxu1 %v1197_v14  ;;  %v1202_v17 = vld [vmem:[#allocation9 + $0x10] ss:$8 sps:$4 sm:$0xff]   ;;  %v1203_v18 = vld [vmem:[#allocation9 + $0x24] ss:$8 sps:$4 sm:$0xff]   ;;  %v1205_v20 = vld [vmem:[#allocation9 + $0x20] ss:$8 sps:$4 sm:$0xff]  }
 0x10b   : > { %590 = vmatpush1.bf16.msra.mxu1 %v1199_v15  ;;  %v1206_v26 = vld [vmem:[#allocation9 + $0x34] ss:$8 sps:$4 sm:$0xff]   ;;  %v1208_v29 = vld [vmem:[#allocation9 + $0x30] ss:$8 sps:$4 sm:$0xff]   ;;  %s1566_s2 = smov 64   ;;  %v529_v39 = vrot.slane %v1901_v6, 1 }
 0x10c   : > { %591 = vmatprep.subr.bf16.mxu1 %v1200_v16  ;;  %v1027_v34 = vld [vmem:[#allocation7] ss:$0 sm:$0xff]  ;;  %v530_v40 = vrot.slane %v1904_v7, 1  ;;  %vm585_vm5 = vcmask 523264   ;;  %v1211_v59 = vld [vmem:[#allocation12 + $0x4] ss:$8 sps:$4 sm:$0xff]  }
 0x10d   : > { %1026 = vmatmul.mubr.msk.bf16.vlgmr.msra.gmra.mrb[0].mxu0 %vm445_vm2, %v432_v13  ;;  %v1209_v60 = vld [vmem:[#allocation12] ss:$8 sps:$4 sm:$0xff]   ;;  %711 = vmatprep.subr.bf16.mxu0 %v1211_v59  ;;  %v1214_v62 = vld [vmem:[#allocation12 + $0x14] ss:$8 sps:$4 sm:$0xff]   ;;  %v1212_v0 = vld [vmem:[#allocation12 + $0x10] ss:$8 sps:$4 sm:$0xff]  }
 0x10e   : > { %743 = vmatprep.mubr.bf16.mxu0 %v1565_v8  ;;  %v531_v44 = vsel %vm494_vm3, %v529_v39, %v530_v40  ;;  %712 = vmatpush1.bf16.msra.mxu0 %v1209_v60  ;;  %s1567_s4 = smov 96   ;;  %v1037_v8 = vld [vmem:[#allocation10] ss:$0 sm:$0xff]  ;;  %v675_v12 = vrot.slane %v1901_v6, 2  ;;  %v676_v13 = vrot.slane %v1904_v7, 2  ;;  %vm707_vm6 = vcmask 261120  }
 0x10f   : > { %592 = vmatpush1.bf16.msra.mxu1 %v1202_v17  ;;  %713 = vmatprep.subr.bf16.mxu0 %v1214_v62  ;;  %vm1568_vm7 = vmmov 0   ;;  %s1049_s14 = sshll.u32 %s1641_s13, 7  ;;  %s866_s25 = sshll.u32 %s393_s26, 4  ;;  %s1942_s25 = int_to_ptr.vmem [resolvable:$true] %s866_s25 }
 0x110   : > { %593 = vmatprep.subr.bf16.mxu1 %v1203_v18  ;;  %v677_v18 = vsel %vm508_vm4, %v675_v12, %v676_v13  ;;  %s1940_s22 = scalar_lea.hbm %s1995_s9, %s1049_s14  ;;  %s853_s13 = scalar_lea.sflag [#allocation6], %s391_s21 }
 0x111   : > { %s1465_s18 = scalar_lea.vmem %s1942_s25, 128  ;;  %p2025_p4 = scmp.ne.s32.totalorder %s2007_s19, 0 }
 0x112   : > { %714 = vmatpush1.bf16.msra.mxu0 %v1212_v0  ;;  %p1466_p3 = scmp.ne.s32.totalorder %s1942_s25, %s1465_s18  ;;  %s1569_s29 = smov [#allocation18]  }
 0x113   : > { %594 = vmatpush1.bf16.msra.mxu1 %v1205_v20  ;;  %1056 = vmatprep.subr.bf16.mxu0 %v1564_v5  ;;  %s1469_s15 = sshll.u32 %s1569_s29, 4  ;;  %s1470_s15 = int_to_ptr.vmem [resolvable:$false] %s1469_s15 }
 0x114   : > { %595 = vmatprep.subr.bf16.mxu1 %v1206_v26  ;;  %p1467_p7 = pnand %p1466_p3, %p2025_p4  ;;  %s1471_s27 = scalar_lea.vmem %s1470_s15, 256 }
 0x115   : > { %p1472_p11 = scmp.lt.s32.totalorder %s1942_s25, %s1470_s15  ;;  %p1473_p13 = scmp.lt.s32.totalorder %s1471_s27, %s1465_s18 }
 0x116   : > { %p1468_p8 = pneg %p1467_p7 }
 0x117   : > { %596 = vmatpush1.bf16.msra.mxu1 %v1208_v29  ;;  %p1474_p1 = por %p1473_p13, %p1472_p11 }
 0x119   : > { %p1475_p0 = pnand %p1474_p1, %p1468_p8 }
 0x1e0   : > { %v483_v19 = vpop.f32.mrb[0].mxu0 }
 0x1e1   : > { %v485_v21 = vpop.f32.mrb[1].mxu0  ;;  %v495_v23 = vrot.slane %v483_v19, 1 }
 0x1e2   : > { %v487_v22 = vpop.f32.mrb[2].mxu0  ;;  %v509_v27 = vrot.slane %v485_v21, 2 }
 0x1e3   : > { %v496_v24 = vrot.slane %v487_v22, 1  ;;  %v489_v25 = vpop.f32.mrb[3].mxu0 }
 0x1e4   : > { %v510_v28 = vrot.slane %v489_v25, 2 }
 0x1e5   : > { %v497_v30 = vsel %vm494_vm3, %v495_v23, %v496_v24 }
 0x1e6   : > { %498 = vrot.lane.b32.xlu0 %v497_v30, %s1566_s2  ;;  %v511_v31 = vsel %vm508_vm4, %v509_v27, %v510_v28 }
 0x1ea   : > { %500 = vrot.lane.b32.xlu0 %v496_v24, %s1566_s2 }
 0x258   : > { %v499_v32 = vpop.permute.xlu0 %498 }
 0x259   : > { %v504_v33 = vadd.f32 %v499_v32, %v483_v19  ;;  %v1216_v32 = vld [vmem:[#allocation15 + $0x8] sm:$0xff]  }
 0x25b   : > { %v514_v35 = vadd.f32 %v511_v31, %v504_v33  ;;  %v1215_v31 = vld [vmem:[#allocation15] sm:$0xff]  }
 0x25c   : > { %v501_v36 = vpop.permute.xlu0 %500 }
 0x25d   : > { %v523_v37 = vadd.f32 %v1027_v34, %v514_v35  ;;  %v505_v38 = vadd.f32 %v501_v36, %v487_v22  ;;  %v1043_v36 = vld [vmem:[#allocation13] ss:$0 sm:$0xff] }
 0x25f   : > { %v515_v41 = vadd.f32 %v510_v28, %v505_v38  ;;  %v525_v42 = vmax.f32 %v523_v37, 0.0 }
 0x261   : > { %v524_v43 = vadd.f32 %v1027_v34, %v515_v41  ;;  %v534_v46 = vmul.f32 %v531_v44, %v525_v42  ;;  %v1044_v42 = vld [vmem:[#allocation16] ss:$0 sm:$0xff] }
 0x263   : > { %v526_v45 = vmax.f32 %v524_v43, 0.0 }
 0x265   : > { %v535_v47 = vmul.f32 %v530_v40, %v526_v45 }
 0x267   : > { %v536_v48 = vpack.c.bf16 %v535_v47, %v534_v46 }
 0x269   : > { %1036 = vmatmul.mubr.msk.bf16.vlgmr.msra.gmra.mrb[0].mxu1 %vm585_vm5, %v536_v48 }
 0x33c   : > { %v623_v49 = vpop.f32.mrb[0].mxu1 }
 0x33d   : > { %v625_v50 = vpop.f32.mrb[1].mxu1  ;;  %v634_v52 = vrot.slane %v623_v49, 1 }
 0x33e   : > { %v627_v51 = vpop.f32.mrb[2].mxu1  ;;  %v647_v55 = vrot.slane %v625_v50, 2 }
 0x33f   : > { %v635_v53 = vrot.slane %v627_v51, 1  ;;  %v629_v54 = vpop.f32.mrb[3].mxu1 }
 0x340   : > { %v648_v56 = vrot.slane %v629_v54, 2 }
 0x341   : > { %v636_v57 = vsel %vm494_vm3, %v634_v52, %v635_v53 }
 0x342   : > { %637 = vrot.lane.b32.xlu1 %v636_v57, %s1566_s2  ;;  %v649_v58 = vsel %vm508_vm4, %v647_v55, %v648_v56 }
 0x346   : > { %639 = vrot.lane.b32.xlu1 %v635_v53, %s1566_s2 }
 0x3b4   : > { %v638_v61 = vpop.permute.xlu1 %637 }
 0x3b5   : > { %v643_v63 = vadd.f32 %v638_v61, %v623_v49 }
 0x3b7   : > { %v652_v1 = vadd.f32 %v649_v58, %v643_v63 }
 0x3b8   : > { %v640_v2 = vpop.permute.xlu1 %639 }
 0x3b9   : > { %v644_v3 = vadd.f32 %v640_v2, %v627_v51  ;;  %656 = vrot.lane.b32.xlu0 %v652_v1, %s1567_s4 }
 0x3bb   : > { %v653_v4 = vadd.f32 %v648_v56, %v644_v3 }
 0x3bd   : > { %658 = vrot.lane.b32.xlu1 %v653_v4, %s1567_s4 }
 0x42b   : > { %v657_v9 = vpop.permute.xlu0 %656 }
 0x42c   : > { %v662_v10 = vmax.f32 %v652_v1, %v657_v9 }
 0x42e   : > { %v671_v11 = vadd.f32 %v1037_v8, %v662_v10 }
 0x42f   : > { %v659_v14 = vpop.permute.xlu1 %658 }
 0x430   : > { %v663_v15 = vmax.f32 %v653_v4, %v659_v14  ;;  %v673_v16 = vmax.f32 %v671_v11, 0.0 }
 0x432   : > { %v672_v17 = vadd.f32 %v1037_v8, %v663_v15  ;;  %v680_v20 = vmul.f32 %v677_v18, %v673_v16 }
 0x434   : > { %v674_v19 = vmax.f32 %v672_v17, 0.0 }
 0x436   : > { %v681_v21 = vmul.f32 %v676_v13, %v674_v19 }
 0x438   : > { %v682_v22 = vpack.c.bf16 %v681_v21, %v680_v20 }
 0x43a   : > { %1042 = vmatmul.mubr.msk.bf16.vlgmr.msra.gmra.mrb[4].mxu0 %vm707_vm6, %v682_v22 }
 0x43b   : > { %1057 = vmatpush3.bf16.msra.mxu0 %v1215_v31  ;;  %1060 = vmatprep.mubr.msk.bf16.mxu0 %vm1568_vm7, %v1564_v5 }
 0x43c   : > { %1058 = vmatprep.subr.bf16.mxu0 %v1564_v5 }
 0x43f   : > { %1059 = vmatpush3.bf16.msra.mxu0 %v1216_v32 }
 0x50d   : > { %v745_v23 = vpop.f32.mrb[4].mxu0 }
 0x50e   : > { %v747_v24 = vpop.f32.mrb[5].mxu0  ;;  %v756_v26 = vrot.slane %v745_v23, 1 }
 0x50f   : > { %v749_v25 = vpop.f32.mrb[6].mxu0  ;;  %v765_v7 = vrot.slane %v747_v24, 2 }
 0x510   : > { %v757_v6 = vrot.slane %v749_v25, 1  ;;  %v751_v27 = vpop.f32.mrb[7].mxu0 }
 0x511   : > { %v766_v28 = vrot.slane %v751_v27, 2 }
 0x512   : > { %v758_v29 = vsel %vm494_vm3, %v756_v26, %v757_v6 }
 0x513   : > { %759 = vrot.lane.b32.xlu0 %v758_v29, %s1566_s2  ;;  %v767_v30 = vsel %vm508_vm4, %v765_v7, %v766_v28 }
 0x585   : > { %v760_v33 = vpop.permute.xlu0 %759 }
 0x586   : > { %v762_v34 = vadd.f32 %v760_v33, %v745_v23 }
 0x588   : > { %v769_v35 = vadd.f32 %v767_v30, %v762_v34 }
 0x58a   : > { %771 = vrot.lane.b32.xlu1 %v769_v35, %s1567_s4 }
 0x5fc   : > { %v772_v37 = vpop.permute.xlu1 %771 }
 0x5fd   : > { %v774_v38 = vmax.f32 %v769_v35, %v772_v37 }
 0x5ff   : > { %v782_v39 = vadd.f32 %v1043_v36, %v774_v38 }
 0x601   : > { %v783_v40 = vmax.f32 %v782_v39, 0.0 }
 0x603   : > { %v784_v41 = vpack.c.bf16 %v783_v40, %v783_v40 }
 0x605   : > { %1061 = vmatmul.mubr.msk.bf16.vlgmr.msra.gmra.mrb[8].mxu0 %vm707_vm6, %v784_v41 }
 0x6d8   : > { %v845_v5 = vpop.f32.mrb[8].mxu0 }
 0x6d9   : > { %v846_v43 = vadd.f32 %v1044_v42, %v845_v5  ;;  %v1062_v44 = vpop.f32.mrb[9].mxu0 }
 0x6da   : > { %v848_v45 = vpop.f32.mrb[10].mxu0 }
 0x6db   : > { %851 = vst [vmem:[%s393_s26] sm:$0xff] %v846_v43  ;;  %v1063_v46 = vpop.f32.mrb[11].mxu0 }
 0x6dc   : > { %1478 = shalt.err (!%p1475_p0)
}
 0x6dd   : > { %s1479_s21 = scalar_lea.hbm %s1940_s22, 128  ;;  %s1483_s23 = scalar_lea.hbm %s1995_s9, 256 }
 0x6de   : > { %p1480_p6 = scmp.ne.s32.totalorder %s1940_s22, %s1479_s21  ;;  %p1484_p12 = scmp.lt.u32.totalorder %s1940_s22, %s1995_s9 }
 0x6df   : > { %p1485_p10 = scmp.lt.u32.totalorder %s1483_s23, %s1479_s21  ;;  %p1487_p3 = scmp.lt.u32.totalorder %s1479_s21, %s1940_s22 }
 0x6e0   : > { %p1481_p5 = pnand %p1480_p6, %p2025_p4 }
 0x6e1   : > { %p1486_p2 = por %p1485_p10, %p1484_p12 }
 0x6e2   : > { %p1482_p9 = pneg %p1481_p5 }
 0x6e3   : > { %p1488_p7 = por %p1487_p3, %p1486_p2 }
 0x6e5   : > { %p1489_p8 = pnand %p1488_p7, %p1482_p9 }
 0x6e7   : > { %1492 = shalt.err (!%p1489_p8)
}
 0x6e8   : > { %1096 = dma.vmem_to_hbm [thread:$0]  (%p2025_p4), %s1942_s25, 128, %s1940_s22, %s853_s13  }
 0x6e9 PF: > { %p1143_p11 = scmp.ge.s32.totalorder %s1549_s12, 2  ;;  %s878_s2 = sand.u32 1, %s1537_s30  }
 0x6ea   : > { %p2026_p13 = scmp.ne.s32.totalorder %s2008_s20, 0  ;;  %s879_s4 = scalar_lea.sflag [#allocation6], %s878_s2 }
 0x6ec   : > { %p1124_p1 = pnand %p1143_p11, %p2026_p13 }
 0x6ee   : > { %1532 = dma.done.wait (!%p1124_p1), %s879_s4, 128  }
 0x6ef   : > { %1534 = vsyncadd (!%p1124_p1), %s879_s4, 4294967168  ;;  %s2027_s12 = sld [smem:[#allocation31_spill]]  ;;  %s2028_s14 = sld [smem:[#allocation30_spill]] }
 0x6f0   : > { %s2029_s11 = sld [smem:[#allocation32_spill]]  ;;  %s2030_s30 = smov %s1541_s10 }
 0x6f5   : > { %p24_p0 = scmp.ge.s32.totalorder %s2027_s12, 4   ;;  %s2031_s10 = smov %s2028_s14 }
 0x6f7   :  { %26 = sbr.rel (!%p24_p0) target bundleno = 11 (0xb), region = 122 }
 0x6fe   :  { %884 = vsyncpa [#allocation5], 1 }
 0x6ff   :  { %886 = vsyncpa [#allocation5 + $0x1], 1 }
 0x700   :  { %887 = vsyncpa [#allocation8], 1 }
 0x701   :  { %888 = vsyncpa [#allocation11], 1 }
 0x702   :  { %889 = vsyncpa [#allocation14], 1 }
 0x703   :  { %890 = vsyncpa [#allocation17], 1 }
 0x704   :  { %891 = vsyncpa [#allocation6], 1 }
 0x705   :  { %893 = vsyncpa [#allocation6 + $0x1], 1 }
 0x706   :  { %894 = vsyncmov [#allocation3] }
 0x709   :  { %s895_s19 = vpop.sfrf %894 }
 0x70a   :  { %p1052_p4 = scmp.ne.s32.totalorder %s895_s19, 0 }
 0x70c   :  { %899 = shalt.err (%p1052_p4)  }

</bundles_post_ra>
